<compile_context>
chip_gen: v6e
topology: v6e:2x2x1
jax: 0.10.0
libtpu: 0.0.40
codegen_flags: <defaults>
</compile_context>

<pallas_src>
import jax
import jax.numpy as jnp
from jax.experimental import pallas as pl
from jax.experimental.pallas import tpu as pltpu

INPUT_SIZE = 3
HIDDEN_SIZE = 128
OUTPUT_SIZE = 2


def _ceil_to(a, m):
    return -(-a // m) * m


def _vmem_capacity_bytes():
    try:
        return int(pltpu.get_tpu_info().vmem_capacity_bytes)
    except Exception:
        return 64 << 20  # conservative (v7x-sized) fallback


def _select_tile(batch):
    """Pick (tile_b, padded_b, vmem_limit) per chip generation."""
    # The output's lane axis is batch, so tiles must be multiples of 128.
    padded_min = _ceil_to(batch, 128)
    if _vmem_capacity_bytes() > (96 << 20):
        # v5e / v6e: 128 MiB physical VMEM -> big tiles, generous scoped limit.
        tb_cap, vmem_limit = 4096, 64 << 20
    else:
        # v7x: only 64 MiB physical VMEM -> smaller tiles, tighter scoped limit.
        tb_cap, vmem_limit = 2048, 24 << 20
    tb = min(tb_cap, padded_min)
    if tb == padded_min and padded_min >= 256:
        # Split into at least two grid steps so a 2-TensorCore chip (v7x) gets
        # both cores busy via the "parallel" batch axis.
        tb = _ceil_to(padded_min // 2, 128)
    padded_b = _ceil_to(padded_min, tb)
    return tb, padded_b, vmem_limit


def mlp_kernel(x_ref, w1_ref, b1_ref, w2_ref, b2_ref, w3_ref, b3_ref, o_ref):
    # ---- fc1 on the VPU (K=3): broadcast multiply-adds in f32. No MXU push,
    #      no 3->8 K padding, raw f32 x straight from HBM. ----
    x = x_ref[...]                                    # (tb, 3) f32
    h1 = (x[:, 0:1] * w1_ref[0:1, :]
          + x[:, 1:2] * w1_ref[1:2, :]
          + x[:, 2:3] * w1_ref[2:3, :]
          + b1_ref[...])                              # (tb, 128) f32
    h1 = jnp.maximum(h1, 0.0)

    # ---- fc2 on the MXU: bf16 operands, f32 accumulation; bias + ReLU in f32. ----
    h2 = jnp.dot(h1.astype(jnp.bfloat16), w2_ref[...],
                 preferred_element_type=jnp.float32) + b2_ref[...]
    h2 = jnp.maximum(h2, 0.0)

    # Dropout(p=0.5): identity in eval/inference mode (matches nn.Dropout.eval()).
    # TODO(synk): training-mode dropout (pltpu.prng_random_bits mask + 2x scale).

    # ---- fc3: w3/b3 zero-padded to 128 columns so the matmul and transpose are
    #      on (8,128)-aligned shapes; store only rows 0:2 of the transposed
    #      result -> lane-dense (2, tb) output block (lane axis = batch). ----
    y = jnp.dot(h2.astype(jnp.bfloat16), w3_ref[...],
                preferred_element_type=jnp.float32) + b3_ref[...]   # (tb, 128)
    yt = y.T                                                        # (128, tb) via XLU
    o_ref[...] = yt[0:OUTPUT_SIZE, :]                               # (2, tb)


def _mlp_xla(x, w1, b1, w2, b2, w3, b3):
    """Plain fused XLA path for tiny batches (single-tile regime)."""
    bf = jnp.bfloat16
    h1 = jnp.maximum(jnp.dot(x, w1) + b1, 0.0)
    h2 = jnp.maximum(
        jnp.dot(h1.astype(bf), w2.astype(bf),
                preferred_element_type=jnp.float32) + b2, 0.0)
    return jnp.dot(h2.astype(bf), w3.astype(bf),
                   preferred_element_type=jnp.float32) + b3


def mlp_forward(x, w1, b1, w2, b2, w3, b3, *, min_pallas_batch=256):
    batch, in_features = x.shape
    assert in_features == INPUT_SIZE

    if batch < min_pallas_batch:
        # pallas_call launch + pad-to-tile fixed cost dominates at this size.
        return _mlp_xla(x, w1, b1, w2, b2, w3, b3)

    tb, padded_b, vmem_limit = _select_tile(batch)

    # The ONLY wrapper-side touch of x: optional zero-pad of the batch dim to a
    # tile multiple. No dtype cast, no feature padding.
    if padded_b != batch:
        x = jnp.pad(x, ((0, padded_b - batch), (0, 0)))

    # Tiny one-time weight prep (~66 KB total): bf16 MXU operands, fc3 weight /
    # bias zero-padded to 128 output columns (padded columns are zero, and only
    # rows 0:2 of the transposed result are ever stored).
    w2_bf = w2.astype(jnp.bfloat16)
    w3_bf = jnp.pad(w3, ((0, 0), (0, HIDDEN_SIZE - OUTPUT_SIZE))).astype(jnp.bfloat16)
    b3_pad = jnp.pad(b3, ((0, 0), (0, HIDDEN_SIZE - OUTPUT_SIZE)))

    grid = (padded_b // tb,)

    flops = 2 * padded_b * (INPUT_SIZE * HIDDEN_SIZE
                            + HIDDEN_SIZE * HIDDEN_SIZE
                            + HIDDEN_SIZE * OUTPUT_SIZE)
    bytes_accessed = (padded_b * INPUT_SIZE * 4                     # x (f32)
                      + w1.size * 4 + w2_bf.size * 2 + w3_bf.size * 2
                      + (b1.size + b2.size + b3_pad.size) * 4
                      + OUTPUT_SIZE * padded_b * 4)                 # output (f32)

    resident = lambda shape: pl.BlockSpec(shape, lambda i: (0, 0))

    out_t = pl.pallas_call(
        mlp_kernel,
        out_shape=jax.ShapeDtypeStruct((OUTPUT_SIZE, padded_b), jnp.float32),
        grid=grid,
        in_specs=[
            pl.BlockSpec((tb, INPUT_SIZE), lambda i: (i, 0)),  # x: streamed per tile
            resident((INPUT_SIZE, HIDDEN_SIZE)),               # w1 (f32, VPU fc1)
            resident((1, HIDDEN_SIZE)),                        # b1
            resident((HIDDEN_SIZE, HIDDEN_SIZE)),              # w2 (bf16)
            resident((1, HIDDEN_SIZE)),                        # b2
            resident((HIDDEN_SIZE, HIDDEN_SIZE)),              # w3 padded (bf16)
            resident((1, HIDDEN_SIZE)),                        # b3 padded
        ],
        out_specs=pl.BlockSpec((OUTPUT_SIZE, tb), lambda i: (0, i)),
        compiler_params=pltpu.CompilerParams(
            dimension_semantics=("parallel",),
            vmem_limit_bytes=vmem_limit,
        ),
        cost_estimate=pl.CostEstimate(
            flops=flops, transcendentals=0, bytes_accessed=bytes_accessed),
    )(x, w1, b1, w2_bf, b2, w3_bf, b3_pad)

    # (2, padded_b) -> (batch, 2); tiny relative to the x traffic.
    return out_t[:, :batch].T


def init_params(key):
    # Deterministic init mimicking nn.Linear's uniform(-1/sqrt(fan_in), 1/sqrt(fan_in)).
    ks = jax.random.split(key, 6)

    def linear(kw, kb, fan_in, fan_out):
        bound = 1.0 / jnp.sqrt(jnp.float32(fan_in))
        w = jax.random.uniform(kw, (fan_in, fan_out), jnp.float32, -bound, bound)
        b = jax.random.uniform(kb, (1, fan_out), jnp.float32, -bound, bound)
        return w, b

    w1, b1 = linear(ks[0], ks[1], INPUT_SIZE, HIDDEN_SIZE)
    w2, b2 = linear(ks[2], ks[3], HIDDEN_SIZE, HIDDEN_SIZE)
    w3, b3 = linear(ks[4], ks[5], HIDDEN_SIZE, OUTPUT_SIZE)
    return w1, b1, w2, b2, w3, b3


def _reference(x, w1, b1, w2, b2, w3, b3):
    # Matches the kernel's numerics: f32 fc1, bf16-operand / f32-accumulate fc2, fc3.
    hp = jax.lax.Precision.HIGHEST
    bf = lambda v: v.astype(jnp.bfloat16)
    h1 = jnp.maximum(jnp.dot(x, w1, precision=hp) + b1, 0.0)
    h2 = jnp.maximum(jnp.dot(bf(h1), bf(w2), precision=hp,
                             preferred_element_type=jnp.float32) + b2, 0.0)
    return jnp.dot(bf(h2), bf(w3), precision=hp,
                   preferred_element_type=jnp.float32) + b3


if __name__ == "__main__":
    key = jax.random.PRNGKey(0)
    k_x, k_p = jax.random.split(key)
    params = init_params(k_p)

    # Pallas path: > min_pallas_batch, deliberately not tile-aligned so batch
    # padding, the multi-step grid and the output slice/transpose are exercised.
    batch = 300
    x = jax.random.normal(k_x, (batch, INPUT_SIZE), jnp.float32)
    out = jax.block_until_ready(mlp_forward(x, *params))
    ref = _reference(x, *params)
    assert out.shape == (batch, OUTPUT_SIZE)
    assert jnp.allclose(out, ref, atol=1e-2, rtol=1e-2), (out, ref)

    # Small-batch fallback path (plain XLA, per review).
    x_small = x[:8]
    out_small = jax.block_until_ready(mlp_forward(x_small, *params))
    assert out_small.shape == (8, OUTPUT_SIZE)
    assert jnp.allclose(out_small, _reference(x_small, *params), atol=1e-2, rtol=1e-2)

    print("KERNEL_OK")
</pallas_src>

<mosaic_0001>
module attributes {stable_mosaic.version = 11 : i64} {
  func.func @mlp_kernel(%arg0: i32, %arg1: memref<256x3xf32, #tpu.memory_space<vmem>>, %arg2: memref<3x128xf32, #tpu.memory_space<vmem>>, %arg3: memref<1x128xf32, #tpu.memory_space<vmem>>, %arg4: memref<128x128xbf16, #tpu.memory_space<vmem>>, %arg5: memref<1x128xf32, #tpu.memory_space<vmem>>, %arg6: memref<128x128xbf16, #tpu.memory_space<vmem>>, %arg7: memref<1x128xf32, #tpu.memory_space<vmem>>, %arg8: memref<2x256xf32, #tpu.memory_space<vmem>>) attributes {dimension_semantics = [#tpu.dimension_semantics<parallel>], iteration_bounds = array<i64: 2>, scalar_prefetch = 0 : i64, scratch_operands = 0 : i64, tpu.core_type = #tpu.core_type<tc>, window_params = [{transform_indices = @transform_0, window_bounds = array<i64: 256, 3>}, {pipeline_mode = #tpu.pipeline_mode<synchronous>, transform_indices = @transform_1, window_bounds = array<i64: 3, 128>}, {pipeline_mode = #tpu.pipeline_mode<synchronous>, transform_indices = @transform_2, window_bounds = array<i64: 1, 128>}, {pipeline_mode = #tpu.pipeline_mode<synchronous>, transform_indices = @transform_3, window_bounds = array<i64: 128, 128>}, {pipeline_mode = #tpu.pipeline_mode<synchronous>, transform_indices = @transform_4, window_bounds = array<i64: 1, 128>}, {pipeline_mode = #tpu.pipeline_mode<synchronous>, transform_indices = @transform_5, window_bounds = array<i64: 128, 128>}, {pipeline_mode = #tpu.pipeline_mode<synchronous>, transform_indices = @transform_6, window_bounds = array<i64: 1, 128>}, {transform_indices = @transform_7, window_bounds = array<i64: 2, 256>}]} {
    %c0 = arith.constant 0 : index
    %c0_0 = arith.constant 0 : index
    %0 = vector.load %arg1[%c0, %c0_0] : memref<256x3xf32, #tpu.memory_space<vmem>>, vector<256x3xf32>
    %1 = vector.extract_strided_slice %0 {offsets = [0, 0], sizes = [256, 1], strides = [1, 1]} : vector<256x3xf32> to vector<256x1xf32>
    %c0_1 = arith.constant 0 : index
    %c0_2 = arith.constant 0 : index
    %2 = vector.load %arg2[%c0_1, %c0_2] : memref<3x128xf32, #tpu.memory_space<vmem>>, vector<1x128xf32>
    %3 = vector.broadcast %1 : vector<256x1xf32> to vector<256x128xf32>
    %4 = vector.broadcast %2 : vector<1x128xf32> to vector<256x128xf32>
    %5 = arith.mulf %3, %4 : vector<256x128xf32>
    %6 = vector.extract_strided_slice %0 {offsets = [0, 1], sizes = [256, 1], strides = [1, 1]} : vector<256x3xf32> to vector<256x1xf32>
    %c1 = arith.constant 1 : index
    %c0_3 = arith.constant 0 : index
    %7 = vector.load %arg2[%c1, %c0_3] : memref<3x128xf32, #tpu.memory_space<vmem>>, vector<1x128xf32>
    %8 = vector.broadcast %6 : vector<256x1xf32> to vector<256x128xf32>
    %9 = vector.broadcast %7 : vector<1x128xf32> to vector<256x128xf32>
    %10 = arith.mulf %8, %9 : vector<256x128xf32>
    %11 = arith.addf %5, %10 : vector<256x128xf32>
    %12 = vector.extract_strided_slice %0 {offsets = [0, 2], sizes = [256, 1], strides = [1, 1]} : vector<256x3xf32> to vector<256x1xf32>
    %c2 = arith.constant 2 : index
    %c0_4 = arith.constant 0 : index
    %13 = vector.load %arg2[%c2, %c0_4] : memref<3x128xf32, #tpu.memory_space<vmem>>, vector<1x128xf32>
    %14 = vector.broadcast %12 : vector<256x1xf32> to vector<256x128xf32>
    %15 = vector.broadcast %13 : vector<1x128xf32> to vector<256x128xf32>
    %16 = arith.mulf %14, %15 : vector<256x128xf32>
    %17 = arith.addf %11, %16 : vector<256x128xf32>
    %c0_5 = arith.constant 0 : index
    %c0_6 = arith.constant 0 : index
    %18 = vector.load %arg3[%c0_5, %c0_6] : memref<1x128xf32, #tpu.memory_space<vmem>>, vector<1x128xf32>
    %19 = vector.broadcast %18 : vector<1x128xf32> to vector<256x128xf32>
    %20 = arith.addf %17, %19 : vector<256x128xf32>
    %cst = arith.constant 0.000000e+00 : f32
    %21 = vector.broadcast %cst : f32 to vector<256x128xf32>
    %22 = arith.maximumf %20, %21 : vector<256x128xf32>
    %23 = arith.truncf %22 : vector<256x128xf32> to vector<256x128xbf16>
    %c0_7 = arith.constant 0 : index
    %c0_8 = arith.constant 0 : index
    %24 = vector.load %arg4[%c0_7, %c0_8] : memref<128x128xbf16, #tpu.memory_space<vmem>>, vector<128x128xbf16>
    %cst_9 = arith.constant dense<0.000000e+00> : vector<256x128xf32>
    %25 = tpu.matmul %23, %24, %cst_9 {dimension_numbers = #tpu.dot_dimension_numbers<[1], [0], [0], [1], [0, 0, 1, 1], [], []>} : vector<256x128xbf16>, vector<128x128xbf16>, vector<256x128xf32> -> vector<256x128xf32>
    %c0_10 = arith.constant 0 : index
    %c0_11 = arith.constant 0 : index
    %26 = vector.load %arg5[%c0_10, %c0_11] : memref<1x128xf32, #tpu.memory_space<vmem>>, vector<1x128xf32>
    %27 = vector.broadcast %26 : vector<1x128xf32> to vector<256x128xf32>
    %28 = arith.addf %25, %27 : vector<256x128xf32>
    %cst_12 = arith.constant 0.000000e+00 : f32
    %29 = vector.broadcast %cst_12 : f32 to vector<256x128xf32>
    %30 = arith.maximumf %28, %29 : vector<256x128xf32>
    %31 = arith.truncf %30 : vector<256x128xf32> to vector<256x128xbf16>
    %c0_13 = arith.constant 0 : index
    %c0_14 = arith.constant 0 : index
    %32 = vector.load %arg6[%c0_13, %c0_14] : memref<128x128xbf16, #tpu.memory_space<vmem>>, vector<128x128xbf16>
    %cst_15 = arith.constant dense<0.000000e+00> : vector<256x128xf32>
    %33 = tpu.matmul %31, %32, %cst_15 {dimension_numbers = #tpu.dot_dimension_numbers<[1], [0], [0], [1], [0, 0, 1, 1], [], []>} : vector<256x128xbf16>, vector<128x128xbf16>, vector<256x128xf32> -> vector<256x128xf32>
    %c0_16 = arith.constant 0 : index
    %c0_17 = arith.constant 0 : index
    %34 = vector.load %arg7[%c0_16, %c0_17] : memref<1x128xf32, #tpu.memory_space<vmem>>, vector<1x128xf32>
    %35 = vector.broadcast %34 : vector<1x128xf32> to vector<256x128xf32>
    %36 = arith.addf %33, %35 : vector<256x128xf32>
    %37 = tpu.transpose %36, [1, 0] : vector<256x128xf32> -> vector<128x256xf32>
    %38 = vector.extract_strided_slice %37 {offsets = [0, 0], sizes = [2, 256], strides = [1, 1]} : vector<128x256xf32> to vector<2x256xf32>
    %c0_18 = arith.constant 0 : index
    %c0_19 = arith.constant 0 : index
    %39 = vector.load %arg8[%c0_18, %c0_19] : memref<2x256xf32, #tpu.memory_space<vmem>>, vector<2x256xf32>
    tpu.vector_store %arg8[%c0_18, %c0_19], %38 {strides = array<i32>} : memref<2x256xf32, #tpu.memory_space<vmem>>, vector<2x256xf32>,
    return
  }
  func.func @transform_0(%arg0: i32) -> (i32, i32) {
    %c0_i32 = arith.constant 0 : i32
    %c0_i32_0 = arith.constant 0 : i32
    return %arg0, %c0_i32 : i32, i32
  }
  func.func @transform_1(%arg0: i32) -> (i32, i32) {
    %c0_i32 = arith.constant 0 : i32
    %c0_i32_0 = arith.constant 0 : i32
    %c0_i32_1 = arith.constant 0 : i32
    return %c0_i32, %c0_i32_0 : i32, i32
  }
  func.func @transform_2(%arg0: i32) -> (i32, i32) {
    %c0_i32 = arith.constant 0 : i32
    %c0_i32_0 = arith.constant 0 : i32
    %c0_i32_1 = arith.constant 0 : i32
    return %c0_i32, %c0_i32_0 : i32, i32
  }
  func.func @transform_3(%arg0: i32) -> (i32, i32) {
    %c0_i32 = arith.constant 0 : i32
    %c0_i32_0 = arith.constant 0 : i32
    %c0_i32_1 = arith.constant 0 : i32
    return %c0_i32, %c0_i32_0 : i32, i32
  }
  func.func @transform_4(%arg0: i32) -> (i32, i32) {
    %c0_i32 = arith.constant 0 : i32
    %c0_i32_0 = arith.constant 0 : i32
    %c0_i32_1 = arith.constant 0 : i32
    return %c0_i32, %c0_i32_0 : i32, i32
  }
  func.func @transform_5(%arg0: i32) -> (i32, i32) {
    %c0_i32 = arith.constant 0 : i32
    %c0_i32_0 = arith.constant 0 : i32
    %c0_i32_1 = arith.constant 0 : i32
    return %c0_i32, %c0_i32_0 : i32, i32
  }
  func.func @transform_6(%arg0: i32) -> (i32, i32) {
    %c0_i32 = arith.constant 0 : i32
    %c0_i32_0 = arith.constant 0 : i32
    %c0_i32_1 = arith.constant 0 : i32
    return %c0_i32, %c0_i32_0 : i32, i32
  }
  func.func @transform_7(%arg0: i32) -> (i32, i32) {
    %c0_i32 = arith.constant 0 : i32
    %c0_i32_0 = arith.constant 0 : i32
    return %c0_i32, %arg0 : i32, i32
  }
}

</mosaic_0001>

<bundles_post_ra>
// kernel: tpu_custom_call.1
= control target key start
LH: loop header
LB: loop body
LE: loop exit
PB: predicated region body
PF: predicated region fallthrough
CT: control target
= control target key end

     0   :  { %12 = vsyncpa [#allocation3], 0  ;;  %s2636_s0 = inlined_call_operand.vmem [shape: f32[512,3], index: 0, kind: input, shape index: {}]   ;;  %s2637_s1 = inlined_call_operand.vmem [shape: f32[3,128], index: 1, kind: input, shape index: {}]   ;;  %s2638_s2 = inlined_call_operand.vmem [shape: f32[1,128], index: 2, kind: input, shape index: {}]   ;;  %s2639_s3 = inlined_call_operand.vmem [shape: bf16[128,128], index: 3, kind: input, shape index: {}]   ;;  %s2640_s4 = inlined_call_operand.vmem [shape: f32[1,128], index: 4, kind: input, shape index: {}]   ;;  %s2641_s5 = inlined_call_operand.vmem [shape: bf16[128,128], index: 5, kind: input, shape index: {}]   ;;  %s2642_s6 = inlined_call_operand.vmem [shape: f32[1,128], index: 6, kind: input, shape index: {}]   ;;  %s2643_s7 = inlined_call_operand.hbm [shape: f32[2,512], index: 7, kind: output, shape index: {}]  }
   0x1   :  { %14 = vsyncpa [#allocation3 + $0x1], 0  ;;  %s2041_s24 = smov 0   ;;  %s2043_s25 = smov 0  }
   0x2   :  { %s2045_s26 = smov 0   ;;  %s2047_s27 = smov 0  }
   0x3 LB: > { %s2062_s28 = sadd.s32 4294967295, %s1995_s27   ;;  %s1653_s29 = sadd.s32 4294967294, %s1995_s27   ;;  %s1995_s27 = sphi %s2047_s27, %s2649_s27   ;;  %s1991_s26 = sphi %s2045_s26, %s2648_s26   ;;  %s1987_s25 = sphi %s2043_s25, %s2647_s25   ;;  %s1983_s24 = sphi %s2041_s24, %s2646_s24  }
   0x4   : > { %s2066_s30 = sadd.s32 1, %s1995_s27   ;;  %s179_s8 = sadd.s32 1, %s1991_s26 }
   0x5   : > { %s176_s9 = ssub.s32 %s1995_s27, %s2066_s30  ;;  %p189_p0 = scmp.ne.s32.totalorder %s1991_s26, %s1987_s25 }
   0x6   : > { %p177_p1 = scmp.eq.s32.totalorder %s176_s9, 0  ;;  %p190_p2 = scmp.eq.s32.totalorder %s2062_s28, 1 }
   0x7   : > { %p195_p3 = scmp.ne.s32.totalorder %s1987_s25, %s1983_s24  ;;  %p196_p4 = scmp.eq.s32.totalorder %s1653_s29, 1 }
   0x8   : > { %s2077_s10 = scalar_select %p177_p1, %s1991_s26, %s179_s8  }
   0x9   : > { %p2079_p5 = por %p190_p2, %p189_p0  ;;  %p2083_p6 = por %p196_p4, %p195_p3 }
   0xa   : > { %p1656_p7 = scmp.ge.s32.totalorder %s1995_s27, 1  ;;  %p241_p8 = scmp.lt.s32.totalorder %s1995_s27, 3 }
   0xc   : > { %p242_p9 = pnand %p1656_p7, %p241_p8 }
   0xd   : > { %s1658_s13 = sshll.u32 (!%p242_p9), %s2062_s28, 5  ;;  %s270_s21 = sand.u32 (!%p242_p9), 1, %s1987_s25  }
   0xe   : > { %245 = sbr.rel (%p242_p9) target bundleno = 922 (0x39a), region = 48  ;;  %p274_p10 = scmp.lt.s32.totalorder (!%p242_p9), %s1658_s13, 63 }
   0xf   : > { %s1657_s22 = sshll.u32 (!%p242_p9), %s270_s21, 2  ;;  %s1688_s23 = sshll.u32 (!%p242_p9), %s2062_s28, 6 }
  0x10   : > { %s272_s29 = scalar_lea.vmem (!%p242_p9), [#allocation2], %s1657_s22  ;;  %s2000_s16 = smov (!%p242_p9), [#allocation2]  }
  0x11   : > { %s1594_s8 = sshll.u32 (!%p242_p9), %s272_s29, 4  ;;  %s1939_s18 = sshll.u32 (!%p242_p9), %s2000_s16, 4  ;;  %s1595_s8 = int_to_ptr.vmem [resolvable:$true] %s1594_s8  ;;  %s1940_s18 = int_to_ptr.vmem [resolvable:$false] %s1939_s18 }
  0x12   : > { %s1935_s15 = scalar_lea.vmem (!%p242_p9), %s1595_s8, 64  ;;  %s1941_s28 = scalar_lea.vmem (!%p242_p9), %s1940_s18, 128 }
  0x13   : > { %v1997_v0 = vmov 1   ;;  %s2651_s13 = smov (!%p274_p10, %s1658_s13), 63  ;;  %v1998_v7 = vmov 0   ;;  %v1999_v8 = vmov 2   ;;  %v1919_v15 = vld [vmem:[%s2639_s3 + $0x38] sm:$0xff]   ;;  %v1920_v17 = vld [vmem:[%s2639_s3 + $0x30] sm:$0xff]   ;;  %p1936_p11 = scmp.ne.s32.totalorder %s1595_s8, %s1935_s15 }
  0x14   : > { %1877 = vset.pattern.permute.xlu0 %v1997_v0  ;;  %1875 = vset.pattern.permute.xlu1 %v1997_v0  ;;  %s1659_s14 = sshll.u32 %s2651_s13, 3  ;;  %v1921_v19 = vld [vmem:[%s2639_s3 + $0x28] sm:$0xff]   ;;  %v1922_v21 = vld [vmem:[%s2639_s3 + $0x20] sm:$0xff]   ;;  %v1923_v22 = vld [vmem:[%s2639_s3 + $0x18] sm:$0xff]   ;;  %p1942_p0 = scmp.lt.s32.totalorder %s1595_s8, %s1940_s18 }
  0x15   : > { %s2095_s17 = scalar_lea.vmem %s2636_s0, %s1659_s14  ;;  %1737 = vmatprep.subr.bf16.mxu0 %v1919_v15  ;;  %v1924_v23 = vld [vmem:[%s2639_s3 + $0x10] sm:$0xff]   ;;  %v1925_v24 = vld [vmem:[%s2639_s3 + $0x8] sm:$0xff]   ;;  %v1926_v26 = vld [vmem:[%s2639_s3] sm:$0xff]   ;;  %s1592_s14 = scalar_lea.hbm %s2643_s7, %s1688_s23 }
  0x16   : > { %v2098_v1 = vld [vmem:[%s2095_s17 + $0x10] sm:$0xff]  ;;  %v281_v2 = vld [vmem:[%s2095_s17] sm:$0xff]  ;;  %v2103_v3 = vld [vmem:[%s2095_s17 + $0x28] sm:$0xff]  ;;  %1738 = vmatpush3.bf16.msra.mxu0 %v1919_v15  ;;  %p1937_p12 = pnand %p1936_p11, %p2079_p5  ;;  %p1943_p1 = scmp.lt.s32.totalorder %s1941_s28, %s1935_s15 }
  0x17   : > { %520 = vperm.xlu0 %1877, %v2098_v1   ;;  %512 = vperm.xlu1 %1875, %v281_v2   ;;  %v2106_v4 = vld [vmem:[%s2095_s17 + $0x8] sm:$0xff]  ;;  %v2111_v5 = vld [vmem:[%s2095_s17 + $0x30] sm:$0xff]  ;;  %v284_v6 = vld [vmem:[%s2095_s17 + $0x18] sm:$0xff] }
  0x18   : > { %v285_v9 = vld [vmem:[%s2095_s17 + $0x20] sm:$0xff]  ;;  %v288_v10 = vld [vmem:[%s2095_s17 + $0x38] sm:$0xff]  ;;  %v2123_v11 = vld [vmem:[%s2095_s17 + $0x48] sm:$0xff]  ;;  %1739 = vmatprep.subr.bf16.mxu0 %v1920_v17  ;;  %p1938_p13 = pneg %p1937_p12  ;;  %p1944_p2 = por %p1943_p1, %p1942_p0 }
  0x19   : > { %v2128_v12 = vld [vmem:[%s2095_s17 + $0x60] sm:$0xff]  ;;  %v2132_v13 = vld [vmem:[%s2095_s17 + $0x78] sm:$0xff]  ;;  %v2138_v14 = vld [vmem:[%s2095_s17 + $0x88] sm:$0xff] }
  0x1a   : > { %v2146_v16 = vld [vmem:[%s2095_s17 + $0xa0] sm:$0xff]  ;;  %v2155_v18 = vld [vmem:[%s2095_s17 + $0xb8] sm:$0xff]  ;;  %1740 = vmatpush3.bf16.msra.mxu0 %v1920_v17  ;;  %v2162_v20 = vld [vmem:[%s2095_s17 + $0xc8] sm:$0xff]  ;;  %p1945_p3 = pnand %p1944_p2, %p1938_p13 }
  0x1b   : > { %532 = vperm.xlu0 %1877, %v2103_v3   ;;  %516 = vperm.xlu1 %1875, %v2106_v4   ;;  %v289_v25 = vld [vmem:[%s2095_s17 + $0x40] sm:$0xff]  ;;  %v291_v27 = vld [vmem:[%s2095_s17 + $0x50] sm:$0xff]  ;;  %v292_v28 = vld [vmem:[%s2095_s17 + $0x58] sm:$0xff] }
  0x1c   : > { %1741 = vmatprep.subr.bf16.mxu0 %v1921_v19  ;;  %v2199_v29 = vld [vmem:[%s2095_s17 + $0x90] sm:$0xff]  ;;  %v2210_v31 = vld [vmem:[%s2095_s17 + $0xe0] sm:$0xff]  ;;  %v294_v32 = vld [vmem:[%s2095_s17 + $0x68] sm:$0xff] }
  0x1d   : > { %v2206_v30 = vld [vmem:[%s2095_s17 + $0xd0] sm:$0xff]  ;;  %v2224_v34 = vld [vmem:[%s2095_s17 + $0xa8] sm:$0xff]  ;;  %v297_v42 = vld [vmem:[%s2095_s17 + $0x80] sm:$0xff] }
  0x1e   : > { %1742 = vmatpush3.bf16.msra.mxu0 %v1921_v19  ;;  %v295_v33 = vld [vmem:[%s2095_s17 + $0x70] sm:$0xff]  ;;  %v2246_v43 = vld [vmem:[%s2095_s17 + $0xe8] sm:$0xff]  ;;  %v300_v51 = vld [vmem:[%s2095_s17 + $0x98] sm:$0xff] }
  0x1f   : > { %536 = vperm.xlu0 %1877, %v2111_v5   ;;  %1876 = vset.pattern.permute.xlu1 %v1998_v7  ;;  %v2233_v37 = vld [vmem:[%s2095_s17 + $0xb0] sm:$0xff]  ;;  %v2266_v52 = vld [vmem:[%s2095_s17 + $0xf8] sm:$0xff] }
  0x20   : > { %331 = vperm.xlu1 %1876, %v284_v6   ;;  %1743 = vmatprep.subr.bf16.mxu0 %v1922_v21  ;;  %v2251_v45 = vld [vmem:[%s2095_s17 + $0xf0] sm:$0xff] }
  0x22   : > { %1744 = vmatpush3.bf16.msra.mxu0 %v1922_v21 }
  0x23   : > { %1883 = vset.pattern.permute.xlu0 %v1999_v8  ;;  %1745 = vmatprep.subr.bf16.mxu0 %v1923_v22 }
  0x24   : > { %713 = vperm.xlu0 %1883, %v2106_v4   ;;  %1878 = vset.pattern.permute.xlu1 %v1997_v0 }
  0x25   : > { %524 = vperm.xlu1 %1878, %v284_v6  }
  0x26   : > { %1746 = vmatpush3.bf16.msra.mxu0 %v1923_v22 }
  0x27   : > { %1747 = vmatprep.subr.bf16.mxu0 %v1924_v23 }
  0x28   : > { %725 = vperm.xlu0 %1883, %v285_v9  }
  0x29   : > { %1879 = vset.pattern.permute.xlu1 %v1999_v8 }
  0x2a   : > { %709 = vperm.xlu1 %1879, %v281_v2   ;;  %1748 = vmatpush3.bf16.msra.mxu0 %v1924_v23 }
  0x2b   : > { %1749 = vmatprep.subr.bf16.mxu0 %v1925_v24 }
  0x2c   : > { %737 = vperm.xlu0 %1883, %v288_v10  }
  0x2e   : > { %717 = vperm.xlu1 %1879, %v2098_v1   ;;  %1750 = vmatpush3.bf16.msra.mxu0 %v1925_v24 }
  0x2f   : > { %1751 = vmatprep.subr.bf16.mxu0 %v1926_v26 }
  0x30   : > { %745 = vperm.xlu0 %1883, %v2123_v11  }
  0x32   : > { %721 = vperm.xlu1 %1879, %v284_v6   ;;  %1752 = vmatpush3.bf16.msra.mxu0 %v1926_v26 }
  0x34   : > { %757 = vperm.xlu0 %1883, %v2128_v12  }
  0x36   : > { %1880 = vset.pattern.permute.xlu1 %v1998_v7 }
  0x37   : > { %341 = vperm.xlu1 %1880, %v2103_v3  }
  0x38   : > { %769 = vperm.xlu0 %1883, %v2132_v13  }
  0x3b   : > { %1881 = vset.pattern.permute.xlu1 %v1997_v0 }
  0x3c   : > { %777 = vperm.xlu0 %1883, %v2138_v14   ;;  %528 = vperm.xlu1 %1881, %v285_v9  }
  0x40   : > { %789 = vperm.xlu0 %1883, %v2146_v16   ;;  %1882 = vset.pattern.permute.xlu1 %v1998_v7 }
  0x41   : > { %346 = vperm.xlu1 %1882, %v2111_v5  }
  0x44   : > { %801 = vperm.xlu0 %1883, %v2155_v18  }
  0x45   : > { %351 = vperm.xlu1 %1882, %v288_v10  }
  0x48   : > { %809 = vperm.xlu0 %1883, %v2162_v20  }
  0x49   : > { %1884 = vset.pattern.permute.xlu1 %v1997_v0 }
  0x4a   : > { %540 = vperm.xlu1 %1884, %v288_v10  }
  0x4c   : > { %1911 = vset.pattern.permute.xlu0 %v1998_v7 }
  0x4d   : > { %316 = vperm.xlu0 %1911, %v281_v2  }
  0x4e   : > { %1885 = vset.pattern.permute.xlu1 %v1999_v8 }
  0x4f   : > { %729 = vperm.xlu1 %1885, %v2103_v3   ;;  %v2292_v3 = vld [vmem:[%s2637_s1 + $0x1] ss:$0 sm:$0xff] }
  0x51   : > { %321 = vperm.xlu0 %1911, %v2106_v4   ;;  %v2298_v4 = vld [vmem:[%s2637_s1] ss:$0 sm:$0xff] }
  0x53   : > { %733 = vperm.xlu1 %1885, %v2111_v5   ;;  %v2303_v5 = vld [vmem:[%s2637_s1 + $0x2] ss:$0 sm:$0xff] }
  0x55   : > { %326 = vperm.xlu0 %1911, %v2098_v1  }
  0x57   : > { %1886 = vset.pattern.permute.xlu1 %v1998_v7 }
  0x58   : > { %356 = vperm.xlu1 %1886, %v289_v25  }
  0x59   : > { %336 = vperm.xlu0 %1911, %v285_v9  }
  0x5c   : > { %1887 = vset.pattern.permute.xlu1 %v1997_v0 }
  0x5d   : > { %361 = vperm.xlu0 %1911, %v2123_v11   ;;  %544 = vperm.xlu1 %1887, %v289_v25  }
  0x61   : > { %366 = vperm.xlu0 %1911, %v291_v27   ;;  %548 = vperm.xlu1 %1887, %v2123_v11  }
  0x65   : > { %376 = vperm.xlu0 %1911, %v2128_v12   ;;  %1888 = vset.pattern.permute.xlu1 %v1998_v7 }
  0x66   : > { %371 = vperm.xlu1 %1888, %v292_v28  }
  0x69   : > { %401 = vperm.xlu0 %1911, %v2138_v14  }
  0x6a   : > { %1889 = vset.pattern.permute.xlu1 %v1997_v0 }
  0x6b   : > { %556 = vperm.xlu1 %1889, %v292_v28  }
  0x6d   : > { %406 = vperm.xlu0 %1911, %v2199_v29  }
  0x6f   : > { %1890 = vset.pattern.permute.xlu1 %v1999_v8 }
  0x70   : > { %741 = vperm.xlu1 %1890, %v289_v25  }
  0x71   : > { %416 = vperm.xlu0 %1911, %v2146_v16  }
  0x74   : > { %749 = vperm.xlu1 %1890, %v291_v27  }
  0x75   : > { %441 = vperm.xlu0 %1911, %v2162_v20  }
  0x78   : > { %753 = vperm.xlu1 %1890, %v292_v28  }
  0x79   : > { %446 = vperm.xlu0 %1911, %v2206_v30  }
  0x7c   : > { %1891 = vset.pattern.permute.xlu1 %v1998_v7 }
  0x7d   : > { %456 = vperm.xlu0 %1911, %v2210_v31   ;;  %381 = vperm.xlu1 %1891, %v294_v32  }
  0x81   : > { %1912 = vset.pattern.permute.xlu0 %v1997_v0  ;;  %1892 = vset.pattern.permute.xlu1 %v1997_v0 }
  0x82   : > { %552 = vperm.xlu0 %1912, %v291_v27   ;;  %560 = vperm.xlu1 %1892, %v2128_v12  }
  0x86   : > { %564 = vperm.xlu0 %1912, %v294_v32   ;;  %1893 = vset.pattern.permute.xlu1 %v1998_v7 }
  0x87   : > { %386 = vperm.xlu1 %1893, %v295_v33  }
  0x8a   : > { %568 = vperm.xlu0 %1912, %v295_v33  }
  0x8b   : > { %391 = vperm.xlu1 %1893, %v2132_v13  }
  0x8e   : > { %584 = vperm.xlu0 %1912, %v2199_v29  }
  0x8f   : > { %1894 = vset.pattern.permute.xlu1 %v1997_v0 }
  0x90   : > { %572 = vperm.xlu1 %1894, %v2132_v13  }
  0x92   : > { %v2227_v35 = vpop.permute.xlu1 %512  ;;  %v2229_v36 = vpop.permute.xlu0 %520  ;;  %596 = vperm.xlu0 %1912, %v2224_v34  }
  0x93   : > { %v643_v9 = vmul.f32 %v2292_v3, %v2227_v35  ;;  %v645_v28 = vmul.f32 %v2292_v3, %v2229_v36  ;;  %v2329_v35 = vld [vmem:[%s2638_s2] ss:$0 sm:$0xff] }
  0x94   : > { %1895 = vset.pattern.permute.xlu1 %v1999_v8 }
  0x95   : > { %761 = vperm.xlu1 %1895, %v294_v32  }
  0x96   : > { %v2236_v38 = vpop.permute.xlu1 %516  ;;  %v2238_v39 = vpop.permute.xlu0 %532  ;;  %600 = vperm.xlu0 %1912, %v2233_v37  }
  0x97   : > { %v644_v19 = vmul.f32 %v2292_v3, %v2236_v38  ;;  %v648_v25 = vmul.f32 %v2292_v3, %v2238_v39 }
  0x99   : > { %765 = vperm.xlu1 %1895, %v295_v33  }
  0x9a   : > { %v2241_v40 = vpop.permute.xlu0 %536  ;;  %616 = vperm.xlu0 %1912, %v2206_v30  }
  0x9b   : > { %v332_v41 = vpop.permute.xlu1 %331  ;;  %v649_v33 = vmul.f32 %v2292_v3, %v2241_v40 }
  0x9c   : > { %v481_v13 = vmul.f32 %v2298_v4, %v332_v41 }
  0x9d   : > { %1896 = vset.pattern.permute.xlu1 %v1998_v7 }
  0x9e   : > { %396 = vperm.xlu1 %1896, %v297_v42   ;;  %628 = vperm.xlu0 %1912, %v2246_v43  }
  0x9f   : > { %v714_v44 = vpop.permute.xlu0 %713 }
  0xa0   : > { %v525_v46 = vpop.permute.xlu1 %524 }
  0xa1   : > { %v646_v10 = vmul.f32 %v2292_v3, %v525_v46 }
  0xa2   : > { %1897 = vset.pattern.permute.xlu1 %v1997_v0  ;;  %632 = vperm.xlu0 %1912, %v2251_v45  }
  0xa3   : > { %576 = vperm.xlu1 %1897, %v297_v42   ;;  %v2255_v47 = vpop.permute.xlu0 %725  ;;  %v678_v22 = vadd.f32 %v646_v10, %v481_v13 }
  0xa4   : > { %v844_v36 = vmul.f32 %v2303_v5, %v2255_v47 }
  0xa5   : > { %v710_v48 = vpop.permute.xlu1 %709 }
  0xa6   : > { %1917 = vset.pattern.permute.xlu0 %v1999_v8 }
  0xa7   : > { %580 = vperm.xlu1 %1897, %v2138_v14   ;;  %v2259_v49 = vpop.permute.xlu0 %737  ;;  %821 = vperm.xlu0 %1917, %v2210_v31   ;;  %v840_v14 = vmul.f32 %v2303_v5, %v710_v48 }
  0xa8   : > { %v847_v48 = vmul.f32 %v2303_v5, %v2259_v49 }
  0xa9   : > { %v2262_v50 = vpop.permute.xlu1 %717 }
  0xab   : > { %1898 = vset.pattern.permute.xlu1 %v1998_v7  ;;  %v2269_v53 = vpop.permute.xlu0 %745  ;;  %833 = vperm.xlu0 %1917, %v2266_v52  }
  0xac   : > { %411 = vperm.xlu1 %1898, %v300_v51  }
  0xad   : > { %v722_v54 = vpop.permute.xlu1 %721 }
  0xae   : > { %v843_v15 = vmul.f32 %v2303_v5, %v722_v54 }
  0xaf   : > { %v2272_v55 = vpop.permute.xlu0 %757 }
  0xb0   : > { %1899 = vset.pattern.permute.xlu1 %v1997_v0 }
  0xb1   : > { %588 = vperm.xlu1 %1899, %v300_v51  }
  0xb2   : > { %v342_v56 = vpop.permute.xlu1 %341 }
  0xb3   : > { %v2275_v57 = vpop.permute.xlu0 %769  ;;  %v483_v26 = vmul.f32 %v2298_v4, %v342_v56 }
  0xb5   : > { %1900 = vset.pattern.permute.xlu1 %v1999_v8  ;;  %v680_v54 = vadd.f32 %v648_v25, %v483_v26 }
  0xb6   : > { %773 = vperm.xlu1 %1900, %v297_v42  }
  0xb7   : > { %v529_v58 = vpop.permute.xlu1 %528  ;;  %v2278_v59 = vpop.permute.xlu0 %777 }
  0xb8   : > { %v647_v10 = vmul.f32 %v2292_v3, %v529_v58 }
  0xba   : > { %781 = vperm.xlu1 %1900, %v2199_v29   ;;  %v875_v29 = vadd.f32 %v843_v15, %v678_v22 }
  0xbb   : > { %v2281_v60 = vpop.permute.xlu0 %789 }
  0xbc   : > { %v347_v61 = vpop.permute.xlu1 %346 }
  0xbd   : > { %v484_v38 = vmul.f32 %v2298_v4, %v347_v61  ;;  %v914_v61 = vadd.f32 %v2329_v35, %v875_v29 }
  0xbe   : > { %785 = vperm.xlu1 %1900, %v300_v51   ;;  %v842_v51 = vmul.f32 %v2303_v5, %v2262_v50 }
  0xbf   : > { %v2283_v62 = vpop.permute.xlu0 %801 }
  0xc0   : > { %v352_v63 = vpop.permute.xlu1 %351 }
  0xc1   : > { %v485_v56 = vmul.f32 %v2298_v4, %v352_v63 }
  0xc2   : > { %1901 = vset.pattern.permute.xlu1 %v1998_v7 }
  0xc3   : > { %421 = vperm.xlu1 %1901, %v2224_v34   ;;  %v2287_v1 = vpop.permute.xlu0 %809 }
  0xc5   : > { %v541_v2 = vpop.permute.xlu1 %540 }
  0xc6   : > { %v650_v39 = vmul.f32 %v2292_v3, %v541_v2 }
  0xc7   : > { %1902 = vset.pattern.permute.xlu1 %v1997_v0 }
  0xc8   : > { %v317_v6 = vpop.permute.xlu0 %316  ;;  %592 = vperm.xlu1 %1902, %v2146_v16   ;;  %v841_v16 = vmul.f32 %v2303_v5, %v714_v44 }
  0xc9   : > { %v478_v11 = vmul.f32 %v2298_v4, %v317_v6 }
  0xca   : > { %v730_v12 = vpop.permute.xlu1 %729 }
  0xcb   : > { %v675_v17 = vadd.f32 %v643_v9, %v478_v11  ;;  %v845_v41 = vmul.f32 %v2303_v5, %v730_v12  ;;  %v681_v11 = vadd.f32 %v649_v33, %v484_v38  ;;  %v682_v12 = vadd.f32 %v650_v39, %v485_v56 }
  0xcc   : > { %v322_v21 = vpop.permute.xlu0 %321  ;;  %1903 = vset.pattern.permute.xlu1 %v1998_v7 }
  0xcd   : > { %v479_v23 = vmul.f32 %v2298_v4, %v322_v21  ;;  %426 = vperm.xlu1 %1903, %v2233_v37   ;;  %v872_v24 = vadd.f32 %v840_v14, %v675_v17  ;;  %v877_v13 = vadd.f32 %v845_v41, %v680_v54 }
  0xce   : > { %v734_v27 = vpop.permute.xlu1 %733 }
  0xcf   : > { %v676_v32 = vadd.f32 %v644_v19, %v479_v23  ;;  %v911_v46 = vadd.f32 %v2329_v35, %v872_v24  ;;  %v846_v47 = vmul.f32 %v2303_v5, %v734_v27  ;;  %v946_v23 = vmax.f32 %v914_v61, 0.0 }
  0xd0   : > { %v327_v42 = vpop.permute.xlu0 %326  ;;  %v879_v24 = vadd.f32 %v847_v48, %v682_v12  ;;  %v916_v25 = vadd.f32 %v2329_v35, %v877_v13 }
  0xd1   : > { %v480_v44 = vmul.f32 %v2298_v4, %v327_v42  ;;  %431 = vperm.xlu1 %1903, %v2155_v18   ;;  %v873_v40 = vadd.f32 %v841_v16, %v676_v32  ;;  %v943_v63 = vmax.f32 %v911_v46, 0.0  ;;  %v878_v17 = vadd.f32 %v846_v47, %v681_v11  ;;  %v305_v46 = vld [vmem:[%s2095_s17 + $0xc0] sm:$0xff] }
  0xd2   : > { %v948_v38 = vmax.f32 %v916_v25, 0.0  ;;  %v918_v41 = vadd.f32 %v2329_v35, %v879_v24 }
  0xd3   : > { %v677_v2 = vadd.f32 %v645_v28, %v480_v44  ;;  %v357_v6 = vpop.permute.xlu1 %356  ;;  %v912_v9 = vadd.f32 %v2329_v35, %v873_v40  ;;  %v917_v28 = vadd.f32 %v2329_v35, %v878_v17 }
  0xd4   : > { %v337_v49 = vpop.permute.xlu0 %336 }
  0xd5   : > { %v874_v14 = vadd.f32 %v842_v51, %v677_v2  ;;  %v482_v50 = vmul.f32 %v2298_v4, %v337_v49  ;;  %1904 = vset.pattern.permute.xlu1 %v1997_v0  ;;  %v944_v15 = vmax.f32 %v912_v9, 0.0  ;;  %v949_v42 = vmax.f32 %v917_v28, 0.0 }
  0xd6   : > { %604 = vperm.xlu1 %1904, %v2155_v18  }
  0xd7   : > { %v679_v19 = vadd.f32 %v647_v10, %v482_v50  ;;  %v975_v21 = vpack.c.bf16 %v944_v15, %v943_v63  ;;  %v913_v16 = vadd.f32 %v2329_v35, %v874_v14  ;;  %v486_v10 = vmul.f32 %v2298_v4, %v357_v6  ;;  %v308_v15 = vld [vmem:[%s2095_s17 + $0xd8] sm:$0xff]  ;;  %s1580_s17 = scalar_lea.sflag [#allocation3], %s270_s21 }
  0xd8   : > { %v545_v22 = vpop.permute.xlu1 %544  ;;  %v362_v58 = vpop.permute.xlu0 %361 }
  0xd9   : > { %v876_v26 = vadd.f32 %v844_v36, %v679_v19  ;;  %1753 = vmatprep.mubr.bf16.mxu0 %v975_v21  ;;  %v945_v27 = vmax.f32 %v913_v16, 0.0  ;;  %v487_v48 = vmul.f32 %v2298_v4, %v362_v58  ;;  %v651_v2 = vmul.f32 %v2292_v3, %v545_v22 }
  0xda   : > { %1905 = vset.pattern.permute.xlu1 %v1999_v8 }
  0xdb   : > { %793 = vperm.xlu1 %1905, %v2224_v34   ;;  %v976_v18 = vpack.c.bf16 %v946_v23, %v945_v27  ;;  %v915_v29 = vadd.f32 %v2329_v35, %v876_v26  ;;  %v950_v34 = vmax.f32 %v918_v41, 0.0  ;;  %v683_v13 = vadd.f32 %v651_v2, %v486_v10 }
  0xdc   : > { %v549_v32 = vpop.permute.xlu1 %548  ;;  %v367_v33 = vpop.permute.xlu0 %366 }
  0xdd   : > { %1754 = vmatmul.mubr.bf16.vlgmr.msra.gmra.mxu0 %v976_v18  ;;  %v947_v39 = vmax.f32 %v915_v29, 0.0  ;;  %v652_v51 = vmul.f32 %v2292_v3, %v549_v32  ;;  %v978_v54 = vpack.c.bf16 %v950_v34, %v949_v42  ;;  %v488_v27 = vmul.f32 %v2298_v4, %v367_v33 }
  0xdf   : > { %797 = vperm.xlu1 %1905, %v2233_v37   ;;  %v977_v36 = vpack.c.bf16 %v948_v38, %v947_v39  ;;  %v849_v37 = vmul.f32 %v2303_v5, %v2269_v53  ;;  %v684_v61 = vadd.f32 %v652_v51, %v487_v48 }
  0xe0   : > { %v2359_v44 = vpop.permute.xlu0 %376 }
  0xe1   : > { %1757 = vmatprep.mubr.bf16.mxu0 %v977_v36  ;;  %v372_v40 = vpop.permute.xlu1 %371  ;;  %v881_v11 = vadd.f32 %v849_v37, %v684_v61  ;;  %v490_v51 = vmul.f32 %v2298_v4, %v2359_v44 }
  0xe2   : > { %v489_v25 = vmul.f32 %v2298_v4, %v372_v40 }
  0xe3   : > { %1906 = vset.pattern.permute.xlu1 %v1998_v7  ;;  %v920_v50 = vadd.f32 %v2329_v35, %v881_v11 }
  0xe4   : > { %436 = vperm.xlu1 %1906, %v305_v46   ;;  %v2365_v56 = vpop.permute.xlu0 %401 }
  0xe5   : > { %1758 = vmatmul.mubr.bf16.gmra.mxu0 %v978_v54  ;;  %v952_v21 = vmax.f32 %v920_v50, 0.0 }
  0xe6   : > { %v557_v47 = vpop.permute.xlu1 %556 }
  0xe8   : > { %1907 = vset.pattern.permute.xlu1 %v1997_v0  ;;  %v2371_v9 = vpop.permute.xlu0 %406 }
  0xe9   : > { %608 = vperm.xlu1 %1907, %v305_v46  }
  0xeb   : > { %v742_v12 = vpop.permute.xlu1 %741 }
  0xec   : > { %v848_v49 = vmul.f32 %v2303_v5, %v742_v12  ;;  %v2375_v14 = vpop.permute.xlu0 %416 }
  0xed   : > { %612 = vperm.xlu1 %1907, %v2162_v20   ;;  %v654_v20 = vmul.f32 %v2292_v3, %v557_v47  ;;  %v852_v47 = vmul.f32 %v2303_v5, %v2272_v55 }
  0xee   : > { %v880_v53 = vadd.f32 %v848_v49, %v683_v13  ;;  %v1928_v49 = vld [vmem:[%s2641_s5 + $0x30] sm:$0xff]  }
  0xef   : > { %v750_v63 = vpop.permute.xlu1 %749  ;;  %v686_v28 = vadd.f32 %v654_v20, %v489_v25 }
  0xf0   : > { %v919_v17 = vadd.f32 %v2329_v35, %v880_v53  ;;  %v2381_v19 = vpop.permute.xlu0 %441  ;;  %v850_v39 = vmul.f32 %v2303_v5, %v750_v63 }
  0xf1   : > { %1908 = vset.pattern.permute.xlu1 %v1998_v7 }
  0xf2   : > { %v951_v6 = vmax.f32 %v919_v17, 0.0  ;;  %451 = vperm.xlu1 %1908, %v308_v15  }
  0xf3   : > { %v754_v16 = vpop.permute.xlu1 %753 }
  0xf4   : > { %v2384_v22 = vpop.permute.xlu0 %446  ;;  %v979_v58 = vpack.c.bf16 %v952_v21, %v951_v6  ;;  %v851_v26 = vmul.f32 %v2303_v5, %v754_v16 }
  0xf6   : > { %1909 = vset.pattern.permute.xlu1 %v1997_v0  ;;  %1761 = vmatprep.mubr.bf16.mxu0 %v979_v58  ;;  %v883_v32 = vadd.f32 %v851_v26, %v686_v28 }
  0xf7   : > { %620 = vperm.xlu1 %1909, %v308_v15  }
  0xf8   : > { %v382_v23 = vpop.permute.xlu1 %381  ;;  %v2388_v24 = vpop.permute.xlu0 %456  ;;  %v922_v42 = vadd.f32 %v2329_v35, %v883_v32 }
  0xf9   : > { %v491_v55 = vmul.f32 %v2298_v4, %v382_v23  ;;  %v1930_v23 = vld [vmem:[%s2641_s5 + $0x20] sm:$0xff]  }
  0xfa   : > { %v954_v33 = vmax.f32 %v922_v42, 0.0  ;;  %v1931_v42 = vld [vmem:[%s2641_s5 + $0x18] sm:$0xff]  }
  0xfb   : > { %1910 = vset.pattern.permute.xlu1 %v1999_v8 }
  0xfc   : > { %805 = vperm.xlu1 %1910, %v305_v46  }
  0xfd   : > { %v553_v18 = vpop.permute.xlu0 %552  ;;  %v561_v29 = vpop.permute.xlu1 %560 }
  0xfe   : > { %v653_v38 = vmul.f32 %v2292_v3, %v553_v18  ;;  %v655_v54 = vmul.f32 %v2292_v3, %v561_v29 }
 0x100   : > { %v685_v41 = vadd.f32 %v653_v38, %v488_v27  ;;  %813 = vperm.xlu1 %1910, %v2206_v30   ;;  %v1927_v30 = vld [vmem:[%s2641_s5 + $0x38] sm:$0xff]   ;;  %v687_v2 = vadd.f32 %v655_v54, %v490_v51  ;;  %v857_v54 = vmul.f32 %v2303_v5, %v2278_v59  ;;  %v496_v59 = vmul.f32 %v2298_v4, %v2371_v9 }
 0x101   : > { %v565_v37 = vpop.permute.xlu0 %564  ;;  %1785 = vmatprep.subr.bf16.mxu1 %v1927_v30 }
 0x102   : > { %v882_v36 = vadd.f32 %v850_v39, %v685_v41  ;;  %v387_v40 = vpop.permute.xlu1 %386  ;;  %v656_v11 = vmul.f32 %v2292_v3, %v565_v37  ;;  %1786 = vmatpush3.bf16.msra.mxu1 %v1927_v30  ;;  %v884_v53 = vadd.f32 %v852_v47, %v687_v2 }
 0x103   : > { %1787 = vmatprep.subr.bf16.mxu1 %v1928_v49  ;;  %v492_v16 = vmul.f32 %v2298_v4, %v387_v40 }
 0x104   : > { %817 = vperm.xlu1 %1910, %v308_v15   ;;  %v921_v34 = vadd.f32 %v2329_v35, %v882_v36  ;;  %v855_v15 = vmul.f32 %v2303_v5, %v2275_v57  ;;  %v688_v17 = vadd.f32 %v656_v11, %v491_v55  ;;  %v923_v57 = vadd.f32 %v2329_v35, %v884_v53 }
 0x105   : > { %v569_v13 = vpop.permute.xlu0 %568 }
 0x106   : > { %v392_v48 = vpop.permute.xlu1 %391  ;;  %v953_v46 = vmax.f32 %v921_v34, 0.0  ;;  %v657_v6 = vmul.f32 %v2292_v3, %v569_v13  ;;  %1788 = vmatpush3.bf16.msra.mxu1 %v1928_v49  ;;  %v955_v29 = vmax.f32 %v923_v57, 0.0 }
 0x107   : > { %v493_v12 = vmul.f32 %v2298_v4, %v392_v48  ;;  %v1932_v48 = vld [vmem:[%s2641_s5 + $0x10] sm:$0xff]  }
 0x108   : > { %1913 = vset.pattern.permute.xlu1 %v1998_v7  ;;  %v980_v61 = vpack.c.bf16 %v954_v33, %v953_v46  ;;  %v689_v26 = vadd.f32 %v657_v6, %v492_v16  ;;  %v495_v46 = vmul.f32 %v2298_v4, %v2365_v56 }
 0x109   : > { %461 = vperm.xlu1 %1913, %v2246_v43   ;;  %v585_v2 = vpop.permute.xlu0 %584 }
 0x10a   : > { %1762 = vmatmul.mubr.bf16.gmra.mxu0 %v980_v61 }
 0x10b   : > { %v573_v10 = vpop.permute.xlu1 %572 }
 0x10c   : > { %v658_v44 = vmul.f32 %v2292_v3, %v573_v10 }
 0x10d   : > { %1914 = vset.pattern.permute.xlu1 %v1997_v0 }
 0x10e   : > { %624 = vperm.xlu1 %1914, %v2210_v31   ;;  %v690_v50 = vadd.f32 %v658_v44, %v493_v12  ;;  %v1929_v31 = vld [vmem:[%s2641_s5 + $0x28] sm:$0xff]  }
 0x10f   : > { %1789 = vmatprep.subr.bf16.mxu1 %v1929_v31 }
 0x110   : > { %v762_v63 = vpop.permute.xlu1 %761  ;;  %v887_v58 = vadd.f32 %v855_v15, %v690_v50  ;;  %1790 = vmatpush3.bf16.msra.mxu1 %v1929_v31 }
 0x111   : > { %v853_v21 = vmul.f32 %v2303_v5, %v762_v63  ;;  %1791 = vmatprep.subr.bf16.mxu1 %v1930_v23 }
 0x112   : > { %1915 = vset.pattern.permute.xlu1 %v1998_v7  ;;  %v926_v32 = vadd.f32 %v2329_v35, %v887_v58 }
 0x113   : > { %v885_v20 = vadd.f32 %v853_v21, %v688_v17  ;;  %466 = vperm.xlu1 %1915, %v2251_v45  }
 0x114   : > { %v766_v25 = vpop.permute.xlu1 %765  ;;  %1792 = vmatpush3.bf16.msra.mxu1 %v1930_v23  ;;  %v958_v40 = vmax.f32 %v926_v32, 0.0  ;;  %v860_v32 = vmul.f32 %v2303_v5, %v2281_v60 }
 0x115   : > { %v924_v7 = vadd.f32 %v2329_v35, %v885_v20  ;;  %v854_v27 = vmul.f32 %v2303_v5, %v766_v25  ;;  %1793 = vmatprep.subr.bf16.mxu1 %v1931_v42 }
 0x117   : > { %v956_v28 = vmax.f32 %v924_v7, 0.0  ;;  %v886_v18 = vadd.f32 %v854_v27, %v689_v26  ;;  %471 = vperm.xlu1 %1915, %v2266_v52  }
 0x118   : > { %1794 = vmatpush3.bf16.msra.mxu1 %v1931_v42 }
 0x119   : > { %v925_v38 = vadd.f32 %v2329_v35, %v886_v18  ;;  %v397_v39 = vpop.permute.xlu1 %396  ;;  %v981_v41 = vpack.c.bf16 %v956_v28, %v955_v29  ;;  %1795 = vmatprep.subr.bf16.mxu1 %v1932_v48  ;;  %v498_v18 = vmul.f32 %v2298_v4, %v2375_v14 }
 0x11a   : > { %v494_v47 = vmul.f32 %v2298_v4, %v397_v39 }
 0x11b   : > { %v957_v36 = vmax.f32 %v925_v38, 0.0  ;;  %1916 = vset.pattern.permute.xlu1 %v1997_v0  ;;  %1765 = vmatprep.mubr.bf16.mxu0 %v981_v41 }
 0x11c   : > { %636 = vperm.xlu1 %1916, %v2266_v52   ;;  %1796 = vmatpush3.bf16.msra.mxu1 %v1932_v48  ;;  %v1933_v52 = vld [vmem:[%s2641_s5 + $0x8] sm:$0xff]  }
 0x11d   : > { %v982_v34 = vpack.c.bf16 %v958_v40, %v957_v36  ;;  %1797 = vmatprep.subr.bf16.mxu1 %v1933_v52  ;;  %v597_v36 = vpop.permute.xlu0 %596 }
 0x11e   : > { %v577_v33 = vpop.permute.xlu1 %576 }
 0x11f   : > { %1766 = vmatmul.mubr.bf16.gmra.mxu0 %v982_v34  ;;  %v659_v30 = vmul.f32 %v2292_v3, %v577_v33  ;;  %v664_v33 = vmul.f32 %v2292_v3, %v597_v36 }
 0x120   : > { %1918 = vset.pattern.permute.xlu1 %v1999_v8  ;;  %1798 = vmatpush3.bf16.msra.mxu1 %v1933_v52  ;;  %v1934_v8 = vld [vmem:[%s2641_s5] sm:$0xff]  }
 0x121   : > { %825 = vperm.xlu1 %1918, %v2246_v43   ;;  %1799 = vmatprep.subr.bf16.mxu1 %v1934_v8  ;;  %v691_v44 = vadd.f32 %v659_v30, %v494_v47  ;;  %v601_v52 = vpop.permute.xlu0 %600 }
 0x122   : > { %v581_v0 = vpop.permute.xlu1 %580 }
 0x123   : > { %v660_v51 = vmul.f32 %v2292_v3, %v581_v0  ;;  %v863_v0 = vmul.f32 %v2303_v5, %v2283_v62 }
 0x124   : > { %1800 = vmatpush3.bf16.msra.mxu1 %v1934_v8 }
 0x125   : > { %v692_v37 = vadd.f32 %v660_v51, %v495_v46  ;;  %829 = vperm.xlu1 %1918, %v2251_v45   ;;  %v661_v45 = vmul.f32 %v2292_v3, %v585_v2  ;;  %v665_v51 = vmul.f32 %v2292_v3, %v601_v52 }
 0x127   : > { %v889_v43 = vadd.f32 %v857_v54, %v692_v37  ;;  %v412_v56 = vpop.permute.xlu1 %411  ;;  %v693_v55 = vadd.f32 %v661_v45, %v496_v59 }
 0x128   : > { %v497_v15 = vmul.f32 %v2298_v4, %v412_v56 }
 0x129   : > { %v928_v13 = vadd.f32 %v2329_v35, %v889_v43 }
 0x12b   : > { %v960_v6 = vmax.f32 %v928_v13, 0.0 }
 0x12c   : > { %v589_v61 = vpop.permute.xlu1 %588 }
 0x12d   : > { %v662_v53 = vmul.f32 %v2292_v3, %v589_v61 }
 0x12f   : > { %v694_v31 = vadd.f32 %v662_v53, %v497_v15  ;;  %v503_v15 = vmul.f32 %v2298_v4, %v2381_v19 }
 0x131   : > { %v774_v10 = vpop.permute.xlu1 %773 }
 0x132   : > { %v856_v11 = vmul.f32 %v2303_v5, %v774_v10 }
 0x134   : > { %v888_v12 = vadd.f32 %v856_v11, %v691_v44 }
 0x135   : > { %v782_v49 = vpop.permute.xlu1 %781 }
 0x136   : > { %v927_v50 = vadd.f32 %v2329_v35, %v888_v12  ;;  %v858_v63 = vmul.f32 %v2303_v5, %v782_v49 }
 0x138   : > { %v959_v17 = vmax.f32 %v927_v50, 0.0  ;;  %v890_v9 = vadd.f32 %v858_v63, %v693_v55 }
 0x139   : > { %v786_v21 = vpop.permute.xlu1 %785 }
 0x13a   : > { %v859_v16 = vmul.f32 %v2303_v5, %v786_v21  ;;  %v983_v58 = vpack.c.bf16 %v960_v6, %v959_v17  ;;  %v929_v20 = vadd.f32 %v2329_v35, %v890_v9  ;;  %v865_v9 = vmul.f32 %v2303_v5, %v2287_v1 }
 0x13c   : > { %v891_v57 = vadd.f32 %v859_v16, %v694_v31  ;;  %1769 = vmatprep.mubr.bf16.mxu0 %v983_v58  ;;  %v961_v26 = vmax.f32 %v929_v20, 0.0  ;;  %v617_v20 = vpop.permute.xlu0 %616 }
 0x13d   : > { %v669_v19 = vmul.f32 %v2292_v3, %v617_v20 }
 0x13e   : > { %v930_v23 = vadd.f32 %v2329_v35, %v891_v57  ;;  %v422_v25 = vpop.permute.xlu1 %421 }
 0x13f   : > { %v499_v48 = vmul.f32 %v2298_v4, %v422_v25  ;;  %v504_v25 = vmul.f32 %v2298_v4, %v2384_v22 }
 0x140   : > { %v962_v7 = vmax.f32 %v930_v23, 0.0 }
 0x141   : > { %v696_v54 = vadd.f32 %v664_v33, %v499_v48 }
 0x142   : > { %v984_v27 = vpack.c.bf16 %v962_v7, %v961_v26 }
 0x143   : > { %v593_v28 = vpop.permute.xlu1 %592 }
 0x144   : > { %v663_v29 = vmul.f32 %v2292_v3, %v593_v28  ;;  %1770 = vmatmul.mubr.bf16.gmra.mxu0 %v984_v27 }
 0x146   : > { %v695_v38 = vadd.f32 %v663_v29, %v498_v18  ;;  %v701_v18 = vadd.f32 %v669_v19, %v504_v25 }
 0x148   : > { %v892_v39 = vadd.f32 %v860_v32, %v695_v38  ;;  %v427_v41 = vpop.permute.xlu1 %426 }
 0x149   : > { %v500_v37 = vmul.f32 %v2298_v4, %v427_v41 }
 0x14a   : > { %v931_v61 = vadd.f32 %v2329_v35, %v892_v39 }
 0x14b   : > { %v697_v47 = vadd.f32 %v665_v51, %v500_v37 }
 0x14c   : > { %v432_v42 = vpop.permute.xlu1 %431  ;;  %v963_v45 = vmax.f32 %v931_v61, 0.0 }
 0x14d   : > { %v501_v14 = vmul.f32 %v2298_v4, %v432_v42 }
 0x151   : > { %v605_v40 = vpop.permute.xlu1 %604 }
 0x152   : > { %v666_v34 = vmul.f32 %v2292_v3, %v605_v40 }
 0x154   : > { %v698_v46 = vadd.f32 %v666_v34, %v501_v14 }
 0x156   : > { %v794_v60 = vpop.permute.xlu1 %793  ;;  %v895_v43 = vadd.f32 %v863_v0, %v698_v46 }
 0x157   : > { %v861_v8 = vmul.f32 %v2303_v5, %v794_v60 }
 0x158   : > { %v934_v44 = vadd.f32 %v2329_v35, %v895_v43 }
 0x159   : > { %v893_v56 = vadd.f32 %v861_v8, %v696_v54  ;;  %v629_v54 = vpop.permute.xlu0 %628 }
 0x15a   : > { %v798_v30 = vpop.permute.xlu1 %797  ;;  %v966_v55 = vmax.f32 %v934_v44, 0.0 }
 0x15b   : > { %v932_v2 = vadd.f32 %v2329_v35, %v893_v56  ;;  %v862_v10 = vmul.f32 %v2303_v5, %v798_v30 }
 0x15d   : > { %v964_v62 = vmax.f32 %v932_v2, 0.0  ;;  %v894_v59 = vadd.f32 %v862_v10, %v697_v47  ;;  %v633_v43 = vpop.permute.xlu0 %632  ;;  %v506_v47 = vmul.f32 %v2298_v4, %v2388_v24 }
 0x15f   : > { %v933_v11 = vadd.f32 %v2329_v35, %v894_v59  ;;  %v437_v12 = vpop.permute.xlu1 %436  ;;  %v985_v13 = vpack.c.bf16 %v964_v62, %v963_v45 }
 0x160   : > { %v502_v57 = vmul.f32 %v2298_v4, %v437_v12 }
 0x161   : > { %v965_v49 = vmax.f32 %v933_v11, 0.0  ;;  %1773 = vmatprep.mubr.bf16.mxu0 %v985_v13  ;;  %v822_v30 = vpop.permute.xlu0 %821  ;;  %v672_v13 = vmul.f32 %v2292_v3, %v629_v54 }
 0x162   : > { %v868_v10 = vmul.f32 %v2303_v5, %v822_v30 }
 0x163   : > { %v986_v53 = vpack.c.bf16 %v966_v55, %v965_v49 }
 0x164   : > { %v609_v50 = vpop.permute.xlu1 %608 }
 0x165   : > { %1774 = vmatmul.mubr.bf16.gmra.mxu0 %v986_v53  ;;  %v667_v58 = vmul.f32 %v2292_v3, %v609_v50  ;;  %v834_v45 = vpop.permute.xlu0 %833 }
 0x166   : > { %v871_v55 = vmul.f32 %v2303_v5, %v834_v45 }
 0x167   : > { %v699_v26 = vadd.f32 %v667_v58, %v502_v57 }
 0x168   : > { %v613_v63 = vpop.permute.xlu1 %612 }
 0x169   : > { %v668_v17 = vmul.f32 %v2292_v3, %v613_v63 }
 0x16b   : > { %v700_v6 = vadd.f32 %v668_v17, %v503_v15 }
 0x16d   : > { %v897_v21 = vadd.f32 %v865_v9, %v700_v6  ;;  %v452_v31 = vpop.permute.xlu1 %451  ;;  %v673_v9 = vmul.f32 %v2292_v3, %v633_v43 }
 0x16e   : > { %v505_v39 = vmul.f32 %v2298_v4, %v452_v31 }
 0x16f   : > { %v936_v1 = vadd.f32 %v2329_v35, %v897_v21 }
 0x171   : > { %v968_v42 = vmax.f32 %v936_v1, 0.0 }
 0x172   : > { %v621_v16 = vpop.permute.xlu1 %620 }
 0x173   : > { %v670_v29 = vmul.f32 %v2292_v3, %v621_v16  ;;  %v2527_v16 = vld [vmem:[%s2640_s4] ss:$0 sm:$0xff] }
 0x175   : > { %v702_v40 = vadd.f32 %v670_v29, %v505_v39 }
 0x177   : > { %v806_v23 = vpop.permute.xlu1 %805 }
 0x178   : > { %v864_v7 = vmul.f32 %v2303_v5, %v806_v23 }
 0x17a   : > { %v896_v27 = vadd.f32 %v864_v7, %v699_v26 }
 0x17b   : > { %v814_v28 = vpop.permute.xlu1 %813 }
 0x17c   : > { %v935_v32 = vadd.f32 %v2329_v35, %v896_v27  ;;  %v866_v38 = vmul.f32 %v2303_v5, %v814_v28 }
 0x17e   : > { %v967_v41 = vmax.f32 %v935_v32, 0.0  ;;  %v898_v22 = vadd.f32 %v866_v38, %v701_v18 }
 0x17f   : > { %v818_v36 = vpop.permute.xlu1 %817 }
 0x180   : > { %v867_v34 = vmul.f32 %v2303_v5, %v818_v36  ;;  %v987_v33 = vpack.c.bf16 %v968_v42, %v967_v41  ;;  %v937_v48 = vadd.f32 %v2329_v35, %v898_v22 }
 0x182   : > { %v899_v14 = vadd.f32 %v867_v34, %v702_v40  ;;  %1777 = vmatprep.mubr.bf16.mxu0 %v987_v33  ;;  %v969_v52 = vmax.f32 %v937_v48, 0.0 }
 0x184   : > { %v938_v46 = vadd.f32 %v2329_v35, %v899_v14  ;;  %v462_v0 = vpop.permute.xlu1 %461 }
 0x185   : > { %v507_v44 = vmul.f32 %v2298_v4, %v462_v0 }
 0x186   : > { %v970_v60 = vmax.f32 %v938_v46, 0.0 }
 0x187   : > { %v704_v50 = vadd.f32 %v672_v13, %v507_v44 }
 0x188   : > { %v988_v51 = vpack.c.bf16 %v970_v60, %v969_v52 }
 0x189   : > { %v625_v37 = vpop.permute.xlu1 %624 }
 0x18a   : > { %1778 = vmatmul.mubr.bf16.gmra.mxu0 %v988_v51  ;;  %v671_v56 = vmul.f32 %v2292_v3, %v625_v37 }
 0x18c   : > { %v703_v2 = vadd.f32 %v671_v56, %v506_v47 }
 0x18e   : > { %v467_v8 = vpop.permute.xlu1 %466  ;;  %v900_v12 = vadd.f32 %v868_v10, %v703_v2 }
 0x18f   : > { %v508_v24 = vmul.f32 %v2298_v4, %v467_v8 }
 0x190   : > { %v939_v17 = vadd.f32 %v2329_v35, %v900_v12 }
 0x191   : > { %v705_v20 = vadd.f32 %v673_v9, %v508_v24 }
 0x192   : > { %v472_v61 = vpop.permute.xlu1 %471  ;;  %v971_v25 = vmax.f32 %v939_v17, 0.0 }
 0x193   : > { %v509_v11 = vmul.f32 %v2298_v4, %v472_v61 }
 0x197   : > { %v637_v62 = vpop.permute.xlu1 %636 }
 0x198   : > { %v674_v59 = vmul.f32 %v2292_v3, %v637_v62 }
 0x19a   : > { %v706_v49 = vadd.f32 %v674_v59, %v509_v11 }
 0x19c   : > { %v826_v53 = vpop.permute.xlu1 %825  ;;  %v903_v6 = vadd.f32 %v871_v55, %v706_v49 }
 0x19d   : > { %v869_v63 = vmul.f32 %v2303_v5, %v826_v53  ;;  %v1755_v15 = vpop.f32.mrf.mxu0 }
 0x19e   : > { %v942_v26 = vadd.f32 %v2329_v35, %v903_v6  ;;  %v1105_v27 = vadd.f32 %v1755_v15, %v2527_v16 }
 0x19f   : > { %v901_v21 = vadd.f32 %v869_v63, %v704_v50  ;;  %v1096_v31 = vpop.f32.mrf.mxu0 }
 0x1a0   : > { %v830_v58 = vpop.permute.xlu1 %829  ;;  %v1097_v19 = vadd.f32 %v2527_v16, %v1096_v31  ;;  %v974_v22 = vmax.f32 %v942_v26, 0.0  ;;  %v1225_v42 = vmax.f32 %v1105_v27, 0.0 }
 0x1a1   : > { %v940_v57 = vadd.f32 %v2329_v35, %v901_v21  ;;  %v870_v4 = vmul.f32 %v2303_v5, %v830_v58  ;;  %v1756_v23 = vpop.f32.mrf.mxu0 }
 0x1a2   : > { %v1108_v3 = vadd.f32 %v1756_v23, %v2527_v16  ;;  %v1223_v39 = vmax.f32 %v1097_v19, 0.0 }
 0x1a3   : > { %v972_v7 = vmax.f32 %v940_v57, 0.0  ;;  %v902_v1 = vadd.f32 %v870_v4, %v705_v20  ;;  %v1099_v28 = vpop.f32.mrf.mxu0 }
 0x1a4   : > { %v1100_v18 = vadd.f32 %v2527_v16, %v1099_v28  ;;  %v1226_v32 = vmax.f32 %v1108_v3, 0.0 }
 0x1a5   : > { %v941_v29 = vadd.f32 %v2329_v35, %v902_v1  ;;  %v1759_v38 = vpop.f32.mrf.mxu0  ;;  %v989_v5 = vpack.c.bf16 %v972_v7, %v971_v25 }
 0x1a6   : > { %v1224_v41 = vmax.f32 %v1100_v18, 0.0  ;;  %v1256_v33 = vpack.c.bf16 %v1226_v32, %v1225_v42  ;;  %v1121_v35 = vadd.f32 %v1759_v38, %v2527_v16 }
 0x1a7   : > { %v973_v36 = vmax.f32 %v941_v29, 0.0  ;;  %v1112_v40 = vpop.f32.mrf.mxu0  ;;  %1781 = vmatprep.mubr.bf16.mxu0 %v989_v5 }
 0x1a8   : > { %v1255_v34 = vpack.c.bf16 %v1224_v41, %v1223_v39  ;;  %v1113_v46 = vadd.f32 %v2527_v16, %v1112_v40  ;;  %v1229_v8 = vmax.f32 %v1121_v35, 0.0 }
 0x1a9   : > { %v1760_v48 = vpop.f32.mrf.mxu0  ;;  %v990_v14 = vpack.c.bf16 %v974_v22, %v973_v36 }
 0x1aa   : > { %v1124_v0 = vadd.f32 %v1760_v48, %v2527_v16  ;;  %1801 = vmatprep.mubr.bf16.mxu1 %v1255_v34  ;;  %v1227_v54 = vmax.f32 %v1113_v46, 0.0 }
 0x1ab   : > { %v1115_v52 = vpop.f32.mrf.mxu0  ;;  %1782 = vmatmul.mubr.bf16.gmra.mxu0 %v990_v14  ;;  %1802 = vmatmul.mubr.bf16.vlgmr.msra.gmra.mxu1 %v1256_v33 }
 0x1ac   : > { %v1116_v60 = vadd.f32 %v2527_v16, %v1115_v52  ;;  %v1230_v51 = vmax.f32 %v1124_v0, 0.0 }
 0x1ae   : > { %v1228_v37 = vmax.f32 %v1116_v60, 0.0  ;;  %v1258_v56 = vpack.c.bf16 %v1230_v51, %v1229_v8 }
 0x1b0   : > { %v1257_v43 = vpack.c.bf16 %v1228_v37, %v1227_v54 }
 0x1b2   : > { %1805 = vmatprep.mubr.bf16.mxu1 %v1257_v43 }
 0x1b3   : > { %1806 = vmatmul.mubr.bf16.gmra.mxu1 %v1258_v56 }
 0x1ca   : > { %v1763_v61 = vpop.f32.mrf.mxu0 }
 0x1cb   : > { %v1137_v62 = vadd.f32 %v1763_v61, %v2527_v16 }
 0x1cc   : > { %v1128_v30 = vpop.f32.mrf.mxu0 }
 0x1cd   : > { %v1129_v2 = vadd.f32 %v2527_v16, %v1128_v30  ;;  %v1233_v13 = vmax.f32 %v1137_v62, 0.0 }
 0x1ce   : > { %v1764_v47 = vpop.f32.mrf.mxu0 }
 0x1cf   : > { %v1140_v10 = vadd.f32 %v1764_v47, %v2527_v16  ;;  %v1231_v11 = vmax.f32 %v1129_v2, 0.0 }
 0x1d0   : > { %v1131_v59 = vpop.f32.mrf.mxu0 }
 0x1d1   : > { %v1132_v45 = vadd.f32 %v2527_v16, %v1131_v59  ;;  %v1234_v44 = vmax.f32 %v1140_v10, 0.0 }
 0x1d3   : > { %v1232_v12 = vmax.f32 %v1132_v45, 0.0  ;;  %v1260_v55 = vpack.c.bf16 %v1234_v44, %v1233_v13 }
 0x1d5   : > { %v1259_v49 = vpack.c.bf16 %v1232_v12, %v1231_v11  ;;  %v2564_v11 = vld [vmem:[%s2642_s6] ss:$0 sm:$0xff] }
 0x1d7   : > { %1809 = vmatprep.mubr.bf16.mxu1 %v1259_v49 }
 0x1d8   : > { %1810 = vmatmul.mubr.bf16.gmra.mxu1 %v1260_v55 }
 0x1df   : > { %v1767_v53 = vpop.f32.mrf.mxu0 }
 0x1e0   : > { %v1153_v17 = vadd.f32 %v1767_v53, %v2527_v16 }
 0x1e1   : > { %v1144_v50 = vpop.f32.mrf.mxu0 }
 0x1e2   : > { %v1145_v63 = vadd.f32 %v2527_v16, %v1144_v50  ;;  %v1237_v20 = vmax.f32 %v1153_v17, 0.0 }
 0x1e3   : > { %v1768_v24 = vpop.f32.mrf.mxu0 }
 0x1e4   : > { %v1156_v15 = vadd.f32 %v1768_v24, %v2527_v16  ;;  %v1235_v31 = vmax.f32 %v1145_v63, 0.0 }
 0x1e5   : > { %v1147_v9 = vpop.f32.mrf.mxu0 }
 0x1e6   : > { %v1148_v6 = vadd.f32 %v2527_v16, %v1147_v9  ;;  %v1238_v21 = vmax.f32 %v1156_v15, 0.0 }
 0x1e8   : > { %v1236_v58 = vmax.f32 %v1148_v6, 0.0  ;;  %v1262_v4 = vpack.c.bf16 %v1238_v21, %v1237_v20 }
 0x1ea   : > { %v1261_v57 = vpack.c.bf16 %v1236_v58, %v1235_v31 }
 0x1ec   : > { %1813 = vmatprep.mubr.bf16.mxu1 %v1261_v57 }
 0x1ed   : > { %1814 = vmatmul.mubr.bf16.gmra.mxu1 %v1262_v4 }
 0x204   : > { %v1771_v23 = vpop.f32.mrf.mxu0 }
 0x205   : > { %v1169_v7 = vadd.f32 %v1771_v23, %v2527_v16 }
 0x206   : > { %v1160_v25 = vpop.f32.mrf.mxu0 }
 0x207   : > { %v1161_v3 = vadd.f32 %v2527_v16, %v1160_v25  ;;  %v1241_v32 = vmax.f32 %v1169_v7, 0.0 }
 0x208   : > { %v1772_v19 = vpop.f32.mrf.mxu0 }
 0x209   : > { %v1172_v26 = vadd.f32 %v1772_v19, %v2527_v16  ;;  %v1239_v18 = vmax.f32 %v1161_v3, 0.0 }
 0x20a   : > { %v1163_v27 = vpop.f32.mrf.mxu0 }
 0x20b   : > { %v1164_v1 = vadd.f32 %v2527_v16, %v1163_v27  ;;  %v1242_v28 = vmax.f32 %v1172_v26, 0.0 }
 0x20d   : > { %v1240_v29 = vmax.f32 %v1164_v1, 0.0  ;;  %v1264_v5 = vpack.c.bf16 %v1242_v28, %v1241_v32 }
 0x20f   : > { %v1263_v38 = vpack.c.bf16 %v1240_v29, %v1239_v18 }
 0x211   : > { %1817 = vmatprep.mubr.bf16.mxu1 %v1263_v38 }
 0x212   : > { %1818 = vmatmul.mubr.bf16.gmra.mxu1 %v1264_v5 }
 0x225   : > { %v1775_v39 = vpop.f32.mrf.mxu0 }
 0x226   : > { %v1185_v40 = vadd.f32 %v1775_v39, %v2527_v16 }
 0x227   : > { %v1176_v41 = vpop.f32.mrf.mxu0 }
 0x228   : > { %v1177_v42 = vadd.f32 %v2527_v16, %v1176_v41  ;;  %v1245_v0 = vmax.f32 %v1185_v40, 0.0 }
 0x229   : > { %v1776_v22 = vpop.f32.mrf.mxu0 }
 0x22a   : > { %v1188_v36 = vadd.f32 %v1776_v22, %v2527_v16  ;;  %v1243_v14 = vmax.f32 %v1177_v42, 0.0 }
 0x22b   : > { %v1179_v34 = vpop.f32.mrf.mxu0 }
 0x22c   : > { %v1180_v33 = vadd.f32 %v2527_v16, %v1179_v34  ;;  %v1246_v48 = vmax.f32 %v1188_v36, 0.0 }
 0x22e   : > { %v1244_v46 = vmax.f32 %v1180_v33, 0.0  ;;  %v1266_v52 = vpack.c.bf16 %v1246_v48, %v1245_v0 }
 0x230   : > { %v1265_v35 = vpack.c.bf16 %v1244_v46, %v1243_v14 }
 0x232   : > { %1821 = vmatprep.mubr.bf16.mxu1 %v1265_v35 }
 0x233   : > { %1822 = vmatmul.mubr.bf16.gmra.mxu1 %v1266_v52 }
 0x24a   : > { %v1779_v60 = vpop.f32.mrf.mxu0 }
 0x24b   : > { %v1201_v43 = vadd.f32 %v1779_v60, %v2527_v16 }
 0x24c   : > { %v1192_v51 = vpop.f32.mrf.mxu0 }
 0x24d   : > { %v1193_v37 = vadd.f32 %v2527_v16, %v1192_v51  ;;  %v1249_v10 = vmax.f32 %v1201_v43, 0.0 }
 0x24e   : > { %v1780_v54 = vpop.f32.mrf.mxu0 }
 0x24f   : > { %v1204_v8 = vadd.f32 %v1780_v54, %v2527_v16  ;;  %v1247_v47 = vmax.f32 %v1193_v37, 0.0 }
 0x250   : > { %v1195_v56 = vpop.f32.mrf.mxu0 }
 0x251   : > { %v1196_v61 = vadd.f32 %v2527_v16, %v1195_v56  ;;  %v1250_v30 = vmax.f32 %v1204_v8, 0.0 }
 0x253   : > { %v1248_v2 = vmax.f32 %v1196_v61, 0.0  ;;  %v1268_v59 = vpack.c.bf16 %v1250_v30, %v1249_v10 }
 0x255   : > { %v1267_v62 = vpack.c.bf16 %v1248_v2, %v1247_v47 }
 0x257   : > { %1825 = vmatprep.mubr.bf16.mxu1 %v1267_v62 }
 0x258   : > { %1826 = vmatmul.mubr.bf16.gmra.mxu1 %v1268_v59 }
 0x26b   : > { %v1783_v45 = vpop.f32.mrf.mxu0  ;;  %v1803_v44 = vpop.f32.mrf.mxu1 }
 0x26c   : > { %v1217_v63 = vadd.f32 %v1783_v45, %v2527_v16  ;;  %v1385_v4 = vadd.f32 %v1803_v44, %v2564_v11 }
 0x26d   : > { %v1208_v12 = vpop.f32.mrf.mxu0  ;;  %v1376_v13 = vpop.f32.mrf.mxu1 }
 0x26e   : > { %v1377_v49 = vadd.f32 %v2564_v11, %v1376_v13  ;;  %v1209_v50 = vadd.f32 %v2527_v16, %v1208_v12  ;;  %v1253_v57 = vmax.f32 %v1217_v63, 0.0 }
 0x26f   : > { %v1784_v55 = vpop.f32.mrf.mxu0  ;;  %v1804_v53 = vpop.f32.mrf.mxu1 }
 0x270   : > { %v1220_v24 = vadd.f32 %v1784_v55, %v2527_v16  ;;  %1503 = vxpose.xlu1.b32.start [1/16] (narrow) %v1377_v49, 8  ;;  %v1251_v58 = vmax.f32 %v1209_v50, 0.0  ;;  %v1388_v3 = vadd.f32 %v1804_v53, %v2564_v11 }
 0x271   : > { %v1211_v15 = vpop.f32.mrf.mxu0  ;;  %v1379_v17 = vpop.f32.mrf.mxu1 }
 0x272   : > { %v1212_v9 = vadd.f32 %v2527_v16, %v1211_v15  ;;  %v1380_v6 = vadd.f32 %v2564_v11, %v1379_v17  ;;  %v1254_v21 = vmax.f32 %v1220_v24, 0.0 }
 0x273   : > { %v1807_v31 = vpop.f32.mrf.mxu1 }
 0x274   : > { %v1252_v20 = vmax.f32 %v1212_v9, 0.0  ;;  %1504 = vxpose.xlu1.b32.cont [2/16] (narrow) %v1380_v6, 8  ;;  %v1270_v25 = vpack.c.bf16 %v1254_v21, %v1253_v57  ;;  %v1401_v1 = vadd.f32 %v1807_v31, %v2564_v11 }
 0x275   : > { %v1392_v19 = vpop.f32.mrf.mxu1 }
 0x276   : > { %v1269_v23 = vpack.c.bf16 %v1252_v20, %v1251_v58  ;;  %v1393_v16 = vadd.f32 %v2564_v11, %v1392_v19 }
 0x277   : > { %v1808_v26 = vpop.f32.mrf.mxu1 }
 0x278   : > { %1505 = vxpose.xlu1.b32.cont [3/16] (narrow) %v1385_v4, 8  ;;  %1829 = vmatprep.mubr.bf16.mxu1 %v1269_v23  ;;  %v1404_v28 = vadd.f32 %v1808_v26, %v2564_v11 }
 0x279   : > { %1830 = vmatmul.mubr.bf16.gmra.mxu1 %v1270_v25  ;;  %v1395_v7 = vpop.f32.mrf.mxu1 }
 0x27a   : > { %v1396_v27 = vadd.f32 %v2564_v11, %v1395_v7 }
 0x27c   : > { %1506 = vxpose.xlu1.b32.cont [4/16] (narrow) %v1388_v3, 8 }
 0x280   : > { %1507 = vxpose.xlu1.b32.cont [5/16] (narrow) %v1393_v16, 8 }
 0x284   : > { %1508 = vxpose.xlu1.b32.cont [6/16] (narrow) %v1396_v27, 8 }
 0x288   : > { %1509 = vxpose.xlu1.b32.cont [7/16] (narrow) %v1401_v1, 8 }
 0x28c   : > { %1510 = vxpose.xlu1.b32.cont [8/16] (narrow) %v1404_v28, 8 }
 0x298   : > { %v1811_v18 = vpop.f32.mrf.mxu1 }
 0x299   : > { %v1417_v41 = vadd.f32 %v1811_v18, %v2564_v11 }
 0x29a   : > { %v1408_v29 = vpop.f32.mrf.mxu1 }
 0x29b   : > { %v1409_v32 = vadd.f32 %v2564_v11, %v1408_v29 }
 0x29c   : > { %v1812_v38 = vpop.f32.mrf.mxu1 }
 0x29d   : > { %1511 = vxpose.xlu1.b32.cont [9/16] (narrow) %v1409_v32, 8  ;;  %v1420_v22 = vadd.f32 %v1812_v38, %v2564_v11 }
 0x29e   : > { %v1411_v5 = vpop.f32.mrf.mxu1 }
 0x29f   : > { %v1412_v39 = vadd.f32 %v2564_v11, %v1411_v5 }
 0x2a1   : > { %1512 = vxpose.xlu1.b32.cont [10/16] (narrow) %v1412_v39, 8 }
 0x2a5   : > { %1513 = vxpose.xlu1.b32.cont [11/16] (narrow) %v1417_v41, 8 }
 0x2a9   : > { %1514 = vxpose.xlu1.b32.cont [12/16] (narrow) %v1420_v22, 8 }
 0x2ad   : > { %v1815_v42 = vpop.f32.mrf.mxu1 }
 0x2ae   : > { %v1433_v14 = vadd.f32 %v1815_v42, %v2564_v11 }
 0x2af   : > { %v1424_v36 = vpop.f32.mrf.mxu1 }
 0x2b0   : > { %v1425_v40 = vadd.f32 %v2564_v11, %v1424_v36 }
 0x2b1   : > { %v1816_v34 = vpop.f32.mrf.mxu1 }
 0x2b2   : > { %1515 = vxpose.xlu1.b32.cont [13/16] (narrow) %v1425_v40, 8  ;;  %v1436_v46 = vadd.f32 %v1816_v34, %v2564_v11 }
 0x2b3   : > { %v1427_v33 = vpop.f32.mrf.mxu1 }
 0x2b4   : > { %v1428_v48 = vadd.f32 %v2564_v11, %v1427_v33 }
 0x2b6   : > { %1516 = vxpose.xlu1.b32.cont [14/16] (narrow) %v1428_v48, 8 }
 0x2ba   : > { %1517 = vxpose.xlu1.b32.cont [15/16] (narrow) %v1433_v14, 8 }
 0x2be   : > { %1518 = vxpose.xlu1.b32.end [16/16] (narrow) %v1436_v46, 8 }
 0x2d2   : > { %v1819_v0 = vpop.f32.mrf.mxu1 }
 0x2d3   : > { %v1449_v37 = vadd.f32 %v1819_v0, %v2564_v11 }
 0x2d4   : > { %v1440_v35 = vpop.f32.mrf.mxu1 }
 0x2d5   : > { %v1441_v52 = vadd.f32 %v2564_v11, %v1440_v35 }
 0x2d6   : > { %v1820_v60 = vpop.f32.mrf.mxu1 }
 0x2d7   : > { %1535 = vxpose.xlu0.b32.start [1/16] (narrow) %v1441_v52, 8  ;;  %v1452_v8 = vadd.f32 %v1820_v60, %v2564_v11 }
 0x2d8   : > { %v1443_v51 = vpop.f32.mrf.mxu1 }
 0x2d9   : > { %v1444_v54 = vadd.f32 %v2564_v11, %v1443_v51 }
 0x2db   : > { %1536 = vxpose.xlu0.b32.cont [2/16] (narrow) %v1444_v54, 8 }
 0x2df   : > { %1537 = vxpose.xlu0.b32.cont [3/16] (narrow) %v1449_v37, 8 }
 0x2e3   : > { %1538 = vxpose.xlu0.b32.cont [4/16] (narrow) %v1452_v8, 8 }
 0x2f3   : > { %v1823_v43 = vpop.f32.mrf.mxu1 }
 0x2f4   : > { %v1465_v10 = vadd.f32 %v1823_v43, %v2564_v11 }
 0x2f5   : > { %v1456_v56 = vpop.f32.mrf.mxu1 }
 0x2f6   : > { %v1457_v61 = vadd.f32 %v2564_v11, %v1456_v56 }
 0x2f7   : > { %v1824_v30 = vpop.f32.mrf.mxu1 }
 0x2f8   : > { %1539 = vxpose.xlu0.b32.cont [5/16] (narrow) %v1457_v61, 8  ;;  %v1468_v62 = vadd.f32 %v1824_v30, %v2564_v11 }
 0x2f9   : > { %v1459_v47 = vpop.f32.mrf.mxu1 }
 0x2fa   : > { %v1460_v2 = vadd.f32 %v2564_v11, %v1459_v47 }
 0x2fc   : > { %1540 = vxpose.xlu0.b32.cont [6/16] (narrow) %v1460_v2, 8 }
 0x2fe   : > { %v1519_v31 = vpop.trf.xlu1 }
 0x300   : > { %1541 = vxpose.xlu0.b32.cont [7/16] (narrow) %v1465_v10, 8 }
 0x304   : > { %1542 = vxpose.xlu0.b32.cont [8/16] (narrow) %v1468_v62, 8 }
 0x318   : > { %v1827_v59 = vpop.f32.mrf.mxu1 }
 0x319   : > { %v1481_v55 = vadd.f32 %v1827_v59, %v2564_v11 }
 0x31a   : > { %v1472_v45 = vpop.f32.mrf.mxu1 }
 0x31b   : > { %v1473_v44 = vadd.f32 %v2564_v11, %v1472_v45 }
 0x31c   : > { %v1828_v12 = vpop.f32.mrf.mxu1 }
 0x31d   : > { %1543 = vxpose.xlu0.b32.cont [9/16] (narrow) %v1473_v44, 8  ;;  %v1484_v53 = vadd.f32 %v1828_v12, %v2564_v11 }
 0x31e   : > { %v1475_v13 = vpop.f32.mrf.mxu1 }
 0x31f   : > { %v1476_v49 = vadd.f32 %v2564_v11, %v1475_v13 }
 0x321   : > { %1544 = vxpose.xlu0.b32.cont [10/16] (narrow) %v1476_v49, 8 }
 0x325   : > { %1545 = vxpose.xlu0.b32.cont [11/16] (narrow) %v1481_v55, 8 }
 0x329   : > { %1546 = vxpose.xlu0.b32.cont [12/16] (narrow) %v1484_v53, 8 }
 0x339   : > { %v1831_v50 = vpop.f32.mrf.mxu1 }
 0x33a   : > { %v1497_v6 = vadd.f32 %v1831_v50, %v2564_v11 }
 0x33b   : > { %v1488_v24 = vpop.f32.mrf.mxu1 }
 0x33c   : > { %v1489_v63 = vadd.f32 %v2564_v11, %v1488_v24 }
 0x33d   : > { %v1832_v15 = vpop.f32.mrf.mxu1 }
 0x33e   : > { %1547 = vxpose.xlu0.b32.cont [13/16] (narrow) %v1489_v63, 8  ;;  %v1500_v21 = vadd.f32 %v1832_v15, %v2564_v11 }
 0x33f   : > { %v1491_v17 = vpop.f32.mrf.mxu1 }
 0x340   : > { %v1492_v9 = vadd.f32 %v2564_v11, %v1491_v17 }
 0x342   : > { %1548 = vxpose.xlu0.b32.cont [14/16] (narrow) %v1492_v9, 8 }
 0x346   : > { %1549 = vxpose.xlu0.b32.cont [15/16] (narrow) %v1497_v6, 8 }
 0x34a   : > { %1550 = vxpose.xlu0.b32.end [16/16] (narrow) %v1500_v21, 8 }
 0x38a   : > { %v1551_v58 = vpop.trf.xlu0 }
 0x38b   : > { %v1569_v20 = vcombine.low %v1519_v31, %v1551_v58 }
 0x38d   : > { %1682 = vst.sshfl [vmem:[%s272_s29] sm:$0x33 pattern:$0x76325410] %v1569_v20 }
 0x38e   : > { %1948 = shalt.err (!%p1945_p3)
}
 0x38f   : > { %s1949_s19 = scalar_lea.hbm %s1592_s14, 64  ;;  %s1953_s22 = scalar_lea.hbm %s2643_s7, 128 }
 0x390   : > { %p1950_p4 = scmp.ne.s32.totalorder %s1592_s14, %s1949_s19  ;;  %p1954_p9 = scmp.lt.s32.totalorder %s1592_s14, %s2643_s7 }
 0x391   : > { %p1955_p10 = scmp.lt.s32.totalorder %s1953_s22, %s1949_s19 }
 0x392   : > { %p1951_p7 = pnand %p1950_p4, %p2079_p5 }
 0x393   : > { %p1956_p11 = por %p1955_p10, %p1954_p9 }
 0x394   : > { %p1952_p8 = pneg %p1951_p7 }
 0x396   : > { %p1957_p12 = pnand %p1956_p11, %p1952_p8 }
 0x398   : > { %1960 = shalt.err (!%p1957_p12)
}
 0x399   : > { %1833 = dma.vmem_to_hbm [thread:$0]  (%p2079_p5), %s1595_s8, 64, %s1592_s14, %s1580_s17  }
 0x39a PF: > { %p1839_p13 = scmp.ge.s32.totalorder %s1995_s27, 2  ;;  %s1606_s9 = sand.u32 1, %s1983_s24  }
 0x39b   : > { %s1607_s13 = scalar_lea.sflag [#allocation3], %s1606_s9 }
 0x39c   : > { %p1836_p0 = pnand %p1839_p13, %p2083_p6 }
 0x39e   : > { %p1837_p1 = pneg %p1836_p0 }
 0x3a0   : > { %1978 = dma.done.wait (%p1837_p1), %s1607_s13, 64  }
 0x3a1   : > { %1980 = vsyncadd (%p1837_p1), %s1607_s13, 4294967232  ;;  %p17_p2 = scmp.ge.s32.totalorder %s2066_s30, 4   ;;  %s2646_s24 = smov %s1987_s25 }
 0x3a2   : > { %s2647_s25 = smov %s1991_s26  ;;  %s2648_s26 = smov %s2077_s10 }
 0x3a3   : > { %s2649_s27 = smov %s2066_s30  ;;  %19 = sbr.rel (!%p17_p2) target bundleno = 3 (0x3), region = 83 }
 0x3a8   :  { %1612 = vsyncpa [#allocation3], 1 }
 0x3a9   :  { %1614 = vsyncpa [#allocation3 + $0x1], 1 }

</bundles_post_ra>
